<compile_context>
chip_gen: v5e
topology: v5e:2x2
jax: 0.10.0
libtpu: 0.0.40
codegen_flags: <defaults>
</compile_context>

<pallas_src>
import functools

import jax
import jax.numpy as jnp
from jax.experimental import pallas as pl
from jax.experimental.pallas import tpu as pltpu


# ----------------------------------------------------------------------------
# Kernels
# ----------------------------------------------------------------------------
def _proj_kernel(x_ref, w_ref, o_ref, *, compute_dtype):
    x = x_ref[...].astype(compute_dtype)
    o_ref[...] = jnp.dot(x, w_ref[...].astype(compute_dtype),
                         preferred_element_type=jnp.float32).astype(o_ref.dtype)


def _qk_proj_kernel(x_ref, wq_ref, wk_ref, q_ref, k_ref, *, compute_dtype):
    """Fused q/k projection: one read of x, two resident weights, two outputs."""
    x = x_ref[...].astype(compute_dtype)
    q_ref[...] = jnp.dot(x, wq_ref[...].astype(compute_dtype),
                         preferred_element_type=jnp.float32).astype(q_ref.dtype)
    k_ref[...] = jnp.dot(x, wk_ref[...].astype(compute_dtype),
                         preferred_element_type=jnp.float32).astype(k_ref.dtype)


def _rel_attn_kernel(q_ref, k_ref, v_ref, r_ref, wr_ref, br_ref, wo_ref, bo_ref,
                     *out_refs, num_heads, head_dim, scale, compute_dtype,
                     need_weights, approx_recip):
    """One (batch, query-tile) grid step of relation-biased multi-head attention."""
    if need_weights:
        o_ref, p_ref = out_refs
    else:
        (o_ref,) = out_refs
    cd = compute_dtype
    H, Dh = num_heads, head_dim

    q = q_ref[0]                                   # (tq, E)  f32
    k32 = k_ref[0]                                 # (L,  E)  f32
    v = v_ref[0].astype(cd)                        # (L,  E)
    r = r_ref[0]                                   # (tq, L, E) raw relation slab
    tq, E = q.shape
    L = k32.shape[0]

    # relation_project bias folded into q, once for all heads:
    #   (q + b_rel + R@W_rel) . k  ==  (q + b_rel).k + (R@W_rel).k
    qb = q + br_ref[...]                           # (tq, E)

    # Projected relation on the MXU as one clean matmul; never touches HBM.
    r_proj = jnp.dot(r.reshape(tq * L, E).astype(cd), wr_ref[...].astype(cd),
                     preferred_element_type=jnp.float32).reshape(tq, L, E)

    k_cd = k32.astype(cd)
    out_acc = jnp.zeros((tq, E), jnp.float32) + bo_ref[...]   # out_proj bias pre-loaded

    for h in range(H):                             # small static loop, unrolled
        lo, hi = h * Dh, (h + 1) * Dh
        q_h = qb[:, lo:hi].astype(cd)              # (tq, Dh)
        k_h = k_cd[:, lo:hi]                       # (L,  Dh)
        v_h = v[:, lo:hi]                          # (L,  Dh)

        # content score on the MXU (NT dot)
        s = jax.lax.dot_general(q_h, k_h, (((1,), (1,)), ((), ())),
                                preferred_element_type=jnp.float32)      # (tq, L)
        # relation score: Dh-wide multiply + lane-reduce (slab consumed once in total)
        s = s + jnp.sum(r_proj[:, :, lo:hi] * k32[None, :, lo:hi], axis=-1)
        s = s * scale

        # softmax over the key axis (lane axis -> full-width reductions)
        s = s - jnp.max(s, axis=-1, keepdims=True)
        p = jnp.exp(s)
        p = p * pl.reciprocal(jnp.sum(p, axis=-1, keepdims=True), approx=approx_recip)

        if need_weights:
            p_ref[0, h] = p.astype(p_ref.dtype)                          # (tq, L)

        head = jnp.dot(p.astype(cd), v_h, preferred_element_type=jnp.float32)   # (tq, Dh)
        # fused out_proj: accumulate head @ W_out[h] straight into the lane-dense output
        out_acc = out_acc + jnp.dot(head.astype(cd), wo_ref[h].astype(cd),
                                    preferred_element_type=jnp.float32)

    o_ref[0] = out_acc.astype(o_ref.dtype)


# ----------------------------------------------------------------------------
# Tiling helpers
# ----------------------------------------------------------------------------
def _row_tile(m, target):
    """Largest row tile <= target that divides m and is a multiple of 8 (else m)."""
    if m <= target:
        return m
    t = (min(target, m) // 8) * 8
    while t >= 8:
        if m % t == 0:
            return t
        t -= 8
    return m


def _vmem_capacity_bytes():
    try:
        info = pltpu.get_tpu_info()
        cap = getattr(info, "vmem_capacity_bytes", None)
        if cap:
            return int(cap)
    except Exception:
        pass
    return 64 * 1024 * 1024       # conservative (v7x per-TensorCore)


def _attn_vmem_estimate(tq, L, E, H, rel_bytes, need_weights):
    f32 = 4
    rel_blk = 2 * tq * L * E * rel_bytes           # double-buffered relation slab
    kv_blk = 2 * 2 * L * E * f32                   # k and v blocks
    q_blk = 2 * tq * E * f32
    o_blk = 2 * tq * E * f32
    w_blk = 2 * H * tq * L * f32 if need_weights else 0
    wts = 2 * (2 * E * E + 2 * E) * f32            # resident W_rel / W_out / biases
    dh_pad = max(E // H, 128)
    temps = tq * L * E * f32 + tq * L * dh_pad * f32 + 4 * tq * L * f32   # r_proj + per-head temps
    return rel_blk + kv_blk + q_blk + o_blk + w_blk + wts + temps


def _choose_q_tile(L, E, H, rel_bytes, need_weights, budget, max_tile=None):
    cands = {L}
    for d in range(8, L + 1, 8):
        if L % d == 0:
            cands.add(d)
    cands = sorted(cands, reverse=True)
    if max_tile is not None:
        filtered = [c for c in cands if c <= max_tile]
        cands = filtered or [min(cands)]
    for c in cands:
        if _attn_vmem_estimate(c, L, E, H, rel_bytes, need_weights) <= budget:
            return c
    # TODO(synk): if nothing fits, add a key-axis tile (stream relation as (tq, tk, E)
    # chunks into an (H, tq, L) score scratch) so tq can stay MXU-sized on v7x.
    return cands[-1]


# ----------------------------------------------------------------------------
# Pallas wrappers
# ----------------------------------------------------------------------------
def pallas_proj(x, w, *, row_tile=256, compute_dtype=jnp.float32):
    M, K = x.shape
    N = w.shape[1]
    tm = _row_tile(M, row_tile)
    return pl.pallas_call(
        functools.partial(_proj_kernel, compute_dtype=compute_dtype),
        out_shape=jax.ShapeDtypeStruct((M, N), jnp.float32),
        grid=(M // tm,),
        in_specs=[pl.BlockSpec((tm, K), lambda i: (i, 0)),
                  pl.BlockSpec((K, N), lambda i: (0, 0))],
        out_specs=pl.BlockSpec((tm, N), lambda i: (i, 0)),
        compiler_params=pltpu.CompilerParams(dimension_semantics=("parallel",)),
    )(x, w)


def pallas_qk_proj(x, wq, wk, *, row_tile=256, compute_dtype=jnp.float32):
    M, K = x.shape
    Nq, Nk = wq.shape[1], wk.shape[1]
    tm = _row_tile(M, row_tile)
    return pl.pallas_call(
        functools.partial(_qk_proj_kernel, compute_dtype=compute_dtype),
        out_shape=(jax.ShapeDtypeStruct((M, Nq), jnp.float32),
                   jax.ShapeDtypeStruct((M, Nk), jnp.float32)),
        grid=(M // tm,),
        in_specs=[pl.BlockSpec((tm, K), lambda i: (i, 0)),
                  pl.BlockSpec((K, Nq), lambda i: (0, 0)),
                  pl.BlockSpec((K, Nk), lambda i: (0, 0))],
        out_specs=(pl.BlockSpec((tm, Nq), lambda i: (i, 0)),
                   pl.BlockSpec((tm, Nk), lambda i: (i, 0))),
        compiler_params=pltpu.CompilerParams(dimension_semantics=("parallel",)),
    )(x, wq, wk)


def pallas_relation_attention(q, k, v, relation, rel_w, rel_b, out_w, out_b,
                              num_heads, *, q_tile=None, compute_dtype=jnp.float32,
                              need_weights=True, approx_recip=True):
    """q/k/v: (B, L, E); relation: (B, L, L, E) -> (out (B,L,E), [weights (B,H,L,L)])."""
    B, L, E = q.shape
    H = num_heads
    Dh = E // H
    assert k.shape == (B, L, E) and v.shape == (B, L, E)
    assert relation.shape == (B, L, L, E)

    cap = _vmem_capacity_bytes()
    budget = int(cap * 0.7)
    rel_bytes = jnp.dtype(relation.dtype).itemsize
    tq = _choose_q_tile(L, E, H, rel_bytes, need_weights, budget, max_tile=q_tile)
    est = _attn_vmem_estimate(tq, L, E, H, rel_bytes, need_weights)
    vmem_limit = int(min(cap * 9 // 10, max(32 * 1024 * 1024, est * 3 // 2)))

    scale = 1.0 / (Dh ** 0.5)
    kern = functools.partial(_rel_attn_kernel, num_heads=H, head_dim=Dh, scale=scale,
                             compute_dtype=compute_dtype, need_weights=need_weights,
                             approx_recip=approx_recip)

    in_specs = [
        pl.BlockSpec((1, tq, E), lambda b, i: (b, i, 0)),          # q tile
        pl.BlockSpec((1, L, E), lambda b, i: (b, 0, 0)),           # k (all keys)
        pl.BlockSpec((1, L, E), lambda b, i: (b, 0, 0)),           # v
        pl.BlockSpec((1, tq, L, E), lambda b, i: (b, i, 0, 0)),    # raw relation slab
        pl.BlockSpec((E, E), lambda b, i: (0, 0)),                 # W_rel (resident, whole)
        pl.BlockSpec((1, E), lambda b, i: (0, 0)),                 # b_rel
        pl.BlockSpec((H, Dh, E), lambda b, i: (0, 0, 0)),          # W_out pre-split per head
        pl.BlockSpec((1, E), lambda b, i: (0, 0)),                 # b_out
    ]
    if need_weights:
        out_shape = (jax.ShapeDtypeStruct((B, L, E), jnp.float32),
                     jax.ShapeDtypeStruct((B, H, L, L), jnp.float32))
        out_specs = (pl.BlockSpec((1, tq, E), lambda b, i: (b, i, 0)),
                     pl.BlockSpec((1, H, tq, L), lambda b, i: (b, 0, i, 0)))
    else:
        out_shape = jax.ShapeDtypeStruct((B, L, E), jnp.float32)
        out_specs = pl.BlockSpec((1, tq, E), lambda b, i: (b, i, 0))

    res = pl.pallas_call(
        kern,
        out_shape=out_shape,
        grid=(B, L // tq),
        in_specs=in_specs,
        out_specs=out_specs,
        compiler_params=pltpu.CompilerParams(
            dimension_semantics=("parallel", "parallel"),
            vmem_limit_bytes=vmem_limit),
    )(q, k, v, relation, rel_w, rel_b.reshape(1, E),
      out_w.reshape(H, Dh, E), out_b.reshape(1, E))

    if need_weights:
        out, w = res
        return out, w
    return res, None


# ----------------------------------------------------------------------------
# Module forward (glue in plain JAX, hot paths in Pallas)
# ----------------------------------------------------------------------------
def mha_relation_forward(query, key, value, relation, params, num_heads,
                         *, q_tile=None, row_tile=256,
                         compute_dtype=jnp.float32, need_weights=True,
                         weights_layout="torch", approx_recip=True):
    """Forward of MultiheadAttentionRelation, batch_first layout."""
    # TODO(synk): key_padding_mask / attn_mask / dropout paths not implemented.
    B, L, E = query.shape
    assert E % num_heads == 0

    xq = query.reshape(B * L, E)
    if key is query:
        q2d, k2d = pallas_qk_proj(xq, params['q_w'], params['k_w'],
                                  row_tile=row_tile, compute_dtype=compute_dtype)
    else:
        q2d = pallas_proj(xq, params['q_w'], row_tile=row_tile, compute_dtype=compute_dtype)
        k2d = pallas_proj(key.reshape(B * L, E), params['k_w'],
                          row_tile=row_tile, compute_dtype=compute_dtype)
    if value is query:
        v2d = q2d          # v uses q_proj_weight (module quirk) -> identical to q
    else:
        v2d = pallas_proj(value.reshape(B * L, E), params['q_w'],
                          row_tile=row_tile, compute_dtype=compute_dtype)

    q3 = q2d.reshape(B, L, E)
    k3 = k2d.reshape(B, L, E)
    v3 = v2d.reshape(B, L, E)

    out, w = pallas_relation_attention(
        q3, k3, v3, relation, params['rel_w'], params['rel_b'],
        params['out_w'], params['out_b'], num_heads,
        q_tile=q_tile, compute_dtype=compute_dtype,
        need_weights=need_weights, approx_recip=approx_recip)

    if not need_weights:
        return out, None
    if weights_layout == "bhqk":
        return out, w                              # (B, H, Lq, Lk), no extra HBM pass
    return out, jnp.transpose(w, (0, 2, 3, 1))     # torch layout (B, Lq, Lk, H)


def init_mha_relation_params(key, embed_dim, num_heads):
    del num_heads
    E = embed_dim

    def xavier(k, shape):
        lim = (6.0 / (shape[0] + shape[1])) ** 0.5
        return jax.random.uniform(k, shape, jnp.float32, -lim, lim)

    ks = jax.random.split(key, 6)
    return dict(
        q_w=xavier(ks[0], (E, E)),      # q_proj_weight (also used for v: module quirk)
        k_w=xavier(ks[1], (E, E)),      # k_proj_weight
        rel_w=xavier(ks[2], (E, E)),    # relation_project weight, x @ W layout
        rel_b=jax.random.uniform(ks[3], (E,), jnp.float32, -0.1, 0.1),
        out_w=xavier(ks[4], (E, E)),    # out_proj weight, x @ W layout
        out_b=jnp.zeros((E,), jnp.float32),   # constant_(out_proj.bias, 0.)
    )


# ----------------------------------------------------------------------------
# Pure-JAX reference (direct transcription of the torch forward)
# ----------------------------------------------------------------------------
def mha_relation_ref(query, key, value, relation, params, num_heads):
    B, L, E = query.shape
    H = num_heads
    Dh = E // H
    r = relation @ params['rel_w'] + params['rel_b']
    q = (query.reshape(B * L, E) @ params['q_w']).reshape(B, L, H, Dh)
    k = (key.reshape(B * L, E) @ params['k_w']).reshape(B, L, H, Dh)
    v = (value.reshape(B * L, E) @ params['q_w']).reshape(B, L, H, Dh)
    qq = q[:, :, None] + r.reshape(B, L, L, H, Dh)
    a = jnp.einsum('bqkhe,bkhe->bqkh', qq, k) / (Dh ** 0.5)
    a = jax.nn.softmax(a, axis=2)
    o = jnp.einsum('bqkh,bkhe->bqhe', a, v).reshape(B, L, E)
    o = o @ params['out_w'] + params['out_b']
    return o, a


# ----------------------------------------------------------------------------
if __name__ == "__main__":
    B, L, E, H = 2, 16, 32, 4

    key = jax.random.PRNGKey(0)
    kx, kr, kp = jax.random.split(key, 3)
    x = jax.random.normal(kx, (B, L, E), jnp.float32)
    relation = jax.random.normal(kr, (B, L, L, E), jnp.float32)
    params = init_mha_relation_params(kp, E, H)

    # small tiles so the demo exercises multi-step grids on all kernels
    # 1) exact-parity run (exact reciprocal), weights returned in torch layout
    out, weights = mha_relation_forward(x, x, x, relation, params, H,
                                        q_tile=8, row_tile=16, approx_recip=False)
    out = jax.block_until_ready(out)
    weights = jax.block_until_ready(weights)
    assert out.shape == (B, L, E)
    assert weights.shape == (B, L, L, H)

    ref_out, ref_w = mha_relation_ref(x, x, x, relation, params, H)
    ref_out = jax.block_until_ready(ref_out)
    assert jnp.allclose(out, ref_out, rtol=2e-4, atol=2e-4), \
        float(jnp.max(jnp.abs(out - ref_out)))
    assert jnp.allclose(weights, ref_w, rtol=2e-4, atol=2e-4), \
        float(jnp.max(jnp.abs(weights - ref_w)))

    # 2) production defaults: approx EUP reciprocal + need_weights=False fast path
    out_fast, w_none = mha_relation_forward(x, x, x, relation, params, H,
                                            q_tile=8, row_tile=16, need_weights=False)
    out_fast = jax.block_until_ready(out_fast)
    assert w_none is None
    assert jnp.allclose(out_fast, ref_out, rtol=1e-2, atol=1e-2), \
        float(jnp.max(jnp.abs(out_fast - ref_out)))

    print("KERNEL_OK")
</pallas_src>

<mosaic_0001>
module attributes {stable_mosaic.version = 11 : i64} {
  func.func @_qk_proj_kernel(%arg0: i32, %arg1: memref<16x32xf32, #tpu.memory_space<vmem>>, %arg2: memref<32x32xf32, #tpu.memory_space<vmem>>, %arg3: memref<32x32xf32, #tpu.memory_space<vmem>>, %arg4: memref<16x32xf32, #tpu.memory_space<vmem>>, %arg5: memref<16x32xf32, #tpu.memory_space<vmem>>) attributes {dimension_semantics = [#tpu.dimension_semantics<parallel>], iteration_bounds = array<i64: 2>, scalar_prefetch = 0 : i64, scratch_operands = 0 : i64, tpu.core_type = #tpu.core_type<tc>, window_params = [{transform_indices = @transform_0, window_bounds = array<i64: 16, 32>}, {pipeline_mode = #tpu.pipeline_mode<synchronous>, transform_indices = @transform_1, window_bounds = array<i64: 32, 32>}, {pipeline_mode = #tpu.pipeline_mode<synchronous>, transform_indices = @transform_2, window_bounds = array<i64: 32, 32>}, {transform_indices = @transform_3, window_bounds = array<i64: 16, 32>}, {transform_indices = @transform_4, window_bounds = array<i64: 16, 32>}]} {
    %c0 = arith.constant 0 : index
    %c0_0 = arith.constant 0 : index
    %0 = vector.load %arg1[%c0, %c0_0] : memref<16x32xf32, #tpu.memory_space<vmem>>, vector<16x32xf32>
    %c0_1 = arith.constant 0 : index
    %c0_2 = arith.constant 0 : index
    %1 = vector.load %arg2[%c0_1, %c0_2] : memref<32x32xf32, #tpu.memory_space<vmem>>, vector<32x32xf32>
    %cst = arith.constant dense<0.000000e+00> : vector<16x32xf32>
    %2 = tpu.matmul %0, %1, %cst {dimension_numbers = #tpu.dot_dimension_numbers<[1], [0], [0], [1], [0, 0, 1, 1], [], []>} : vector<16x32xf32>, vector<32x32xf32>, vector<16x32xf32> -> vector<16x32xf32>
    %c0_3 = arith.constant 0 : index
    %c0_4 = arith.constant 0 : index
    %3 = vector.load %arg4[%c0_3, %c0_4] : memref<16x32xf32, #tpu.memory_space<vmem>>, vector<16x32xf32>
    tpu.vector_store %arg4[%c0_3, %c0_4], %2 {strides = array<i32>} : memref<16x32xf32, #tpu.memory_space<vmem>>, vector<16x32xf32>,
    %c0_5 = arith.constant 0 : index
    %c0_6 = arith.constant 0 : index
    %4 = vector.load %arg3[%c0_5, %c0_6] : memref<32x32xf32, #tpu.memory_space<vmem>>, vector<32x32xf32>
    %cst_7 = arith.constant dense<0.000000e+00> : vector<16x32xf32>
    %5 = tpu.matmul %0, %4, %cst_7 {dimension_numbers = #tpu.dot_dimension_numbers<[1], [0], [0], [1], [0, 0, 1, 1], [], []>} : vector<16x32xf32>, vector<32x32xf32>, vector<16x32xf32> -> vector<16x32xf32>
    %c0_8 = arith.constant 0 : index
    %c0_9 = arith.constant 0 : index
    %6 = vector.load %arg5[%c0_8, %c0_9] : memref<16x32xf32, #tpu.memory_space<vmem>>, vector<16x32xf32>
    tpu.vector_store %arg5[%c0_8, %c0_9], %5 {strides = array<i32>} : memref<16x32xf32, #tpu.memory_space<vmem>>, vector<16x32xf32>,
    return
  }
  func.func @transform_0(%arg0: i32) -> (i32, i32) {
    %c0_i32 = arith.constant 0 : i32
    %c0_i32_0 = arith.constant 0 : i32
    return %arg0, %c0_i32 : i32, i32
  }
  func.func @transform_1(%arg0: i32) -> (i32, i32) {
    %c0_i32 = arith.constant 0 : i32
    %c0_i32_0 = arith.constant 0 : i32
    %c0_i32_1 = arith.constant 0 : i32
    return %c0_i32, %c0_i32_0 : i32, i32
  }
  func.func @transform_2(%arg0: i32) -> (i32, i32) {
    %c0_i32 = arith.constant 0 : i32
    %c0_i32_0 = arith.constant 0 : i32
    %c0_i32_1 = arith.constant 0 : i32
    return %c0_i32, %c0_i32_0 : i32, i32
  }
  func.func @transform_3(%arg0: i32) -> (i32, i32) {
    %c0_i32 = arith.constant 0 : i32
    %c0_i32_0 = arith.constant 0 : i32
    return %arg0, %c0_i32 : i32, i32
  }
  func.func @transform_4(%arg0: i32) -> (i32, i32) {
    %c0_i32 = arith.constant 0 : i32
    %c0_i32_0 = arith.constant 0 : i32
    return %arg0, %c0_i32 : i32, i32
  }
}

</mosaic_0001>

<bundles_post_ra>
// kernel: tpu_custom_call.1
= control target key start
LH: loop header
LB: loop body
LE: loop exit
PB: predicated region body
PF: predicated region fallthrough
CT: control target
= control target key end

     0   :  { %10 = vsyncpa [#allocation3], 0  ;;  %s1020_s0 = inlined_call_operand.hbm [shape: f32[32,32], index: 0, kind: input, shape index: {}]   ;;  %s1021_s1 = inlined_call_operand.hbm [shape: f32[32,32], index: 1, kind: input, shape index: {}]   ;;  %s1022_s2 = inlined_call_operand.hbm [shape: f32[32,32], index: 2, kind: input, shape index: {}]   ;;  %s1023_s3 = inlined_call_operand.hbm [shape: f32[32,32], index: 3, kind: output, shape index: {0}]   ;;  %s1024_s4 = inlined_call_operand.hbm [shape: f32[32,32], index: 4, kind: output, shape index: {1}]  }
   0x1   :  { %12 = vsyncpa [#allocation3 + $0x1], 0 }
   0x2   :  { %13 = vsyncpa [#allocation6], 0 }
   0x3   :  { %14 = vsyncpa [#allocation4], 0 }
   0x4   :  { %16 = vsyncpa [#allocation4 + $0x1], 0 }
   0x5   :  { %17 = vsyncpa [#allocation10], 0 }
   0x6   :  { %19 = vsyncpa [#allocation10 + $0x1], 0  ;;  %s833_s15 = smov 0   ;;  %s835_s16 = smov 0  }
   0x7   :  { %s837_s17 = smov 0   ;;  %s839_s18 = smov 0  }
   0x8 LB: > { %s854_s19 = sadd.s32 4294967295, %s800_s18   ;;  %s495_s20 = sadd.s32 4294967294, %s800_s18   ;;  %s800_s18 = sphi %s839_s18, %s1034_s18   ;;  %s796_s17 = sphi %s837_s17, %s1033_s17   ;;  %s792_s16 = sphi %s835_s16, %s1032_s16   ;;  %s788_s15 = sphi %s833_s15, %s1031_s15  }
   0x9   : > { %p45_p0 = scmp.ne.s32.totalorder %s792_s16, %s788_s15  ;;  %p46_p1 = scmp.eq.s32.totalorder %s854_s19, 0 }
   0xa   : > { %p111_p2 = scmp.eq.s32.totalorder %s854_s19, 1  ;;  %p117_p3 = scmp.eq.s32.totalorder %s495_s20, 1 }
   0xb   : > { %p863_p4 = por %p46_p1, %p45_p0  ;;  %p496_p5 = scmp.ge.s32.totalorder %s800_s18, 1 }
   0xc   : > { %p868_p6 = por %p117_p3, %p45_p0  ;;  %p150_p7 = scmp.lt.s32.totalorder %s800_s18, 3 }
   0xd   : > { %s161_s25 = sshll.u32 %s1021_s1, 4  ;;  %s802_s27 = smov [#allocation5]   ;;  %s162_s25 = int_to_ptr.hbm [resolvable:$true] %s161_s25 }
   0xe   : > { %p876_p8 = pnand %p496_p5, %p150_p7  ;;  %s163_s28 = sshll.u32 %s802_s27, 4  ;;  %s164_s28 = int_to_ptr.vmem [resolvable:$true] %s163_s28 }
   0xf   : > { %s175_s5 = sshll.u32 %s1022_s2, 4  ;;  %s803_s6 = smov 128   ;;  %s176_s5 = int_to_ptr.hbm [resolvable:$true] %s175_s5 }
  0x10   : > { %p546_p9 = pneg %p876_p8  ;;  %s804_s7 = smov 8  }
  0x11   : > { %s805_s8 = smov [#allocation7]   ;;  %s895_s10 = sadd.s32 1, %s800_s18  }
  0x12   : > { %p547_p10 = pnand %p546_p9, %p46_p1  ;;  %s177_s9 = sshll.u32 %s805_s8, 4  ;;  %s178_s9 = int_to_ptr.vmem [resolvable:$true] %s177_s9 }
  0x13   : > { %s32_s11 = sadd.s32 1, %s796_s17  ;;  %s29_s12 = ssub.s32 %s800_s18, %s895_s10 }
  0x14   : > { %549 = dma.hbm_to_vmem [thread:$0]  (!%p547_p10), %s162_s25, 512, %s164_s28, [#allocation6], %s803_s6, %s803_s6, %s804_s7  }
  0x15   : > { %552 = dma.hbm_to_vmem [thread:$0]  (!%p547_p10), %s176_s5, 512, %s178_s9, [#allocation6], %s803_s6, %s803_s6, %s804_s7  }
  0x16   : > { %p39_p12 = scmp.ne.s32.totalorder %s796_s17, %s792_s16  ;;  %p30_p13 = scmp.eq.s32.totalorder %s29_s12, 0 }
  0x17   : > { %p40_p0 = scmp.eq.s32.totalorder %s800_s18, 0  ;;  %p566_p5 = scmp.lt.s32.totalorder %s800_s18, 2 }
  0x18   : > { %p905_p3 = por %p111_p2, %p39_p12  ;;  %s191_s20 = sand.u32 1, %s796_s17  }
  0x19   : > { %s911_s14 = scalar_select %p30_p13, %s796_s17, %s32_s11  }
  0x1a   : > { %p41_p7 = por %p40_p0, %p39_p12  ;;  %s500_s23 = sshll.u32 %s191_s20, 4 }
  0x1b   : > { %s521_s24 = sshll.u32 %s800_s18, 4  ;;  %s195_s29 = scalar_lea.vmem [#allocation2], %s500_s23 }
  0x1c   : > { %s200_s28 = scalar_lea.hbm %s1020_s0, %s521_s24  ;;  %s203_s30 = sshll.u32 %s195_s29, 4  ;;  %s204_s30 = int_to_ptr.vmem [resolvable:$true] %s203_s30 }
  0x1d   : > { %s201_s5 = sshll.u32 %s200_s28, 4  ;;  %p918_p2 = pnand %p566_p5, %p41_p7  ;;  %s202_s5 = int_to_ptr.hbm [resolvable:$true] %s201_s5 }
  0x1e   : > { %s192_s9 = scalar_lea.sflag [#allocation3], %s191_s20  ;;  %s668_s11 = sshra.s32 %s202_s5, 4  ;;  %s669_s11 = int_to_ptr.hbm [resolvable:$true] %s668_s11 }
  0x1f   : > { %s670_s12 = scalar_lea.hbm %s669_s11, 16  ;;  %p672_p10 = pneg %p918_p2 }
  0x20   : > { %p671_p9 = scmp.ne.s32.totalorder %s669_s11, %s670_s12  ;;  %s675_s25 = scalar_lea.hbm %s1020_s0, 32 }
  0x21   : > { %p676_p0 = scmp.lt.s32.totalorder %s669_s11, %s1020_s0  ;;  %p677_p5 = scmp.lt.s32.totalorder %s675_s25, %s670_s12 }
  0x22   : > { %p673_p12 = pnand %p672_p10, %p671_p9 }
  0x23   : > { %p678_p7 = por %p677_p5, %p676_p0 }
  0x24   : > { %p674_p13 = pneg %p673_p12 }
  0x26   : > { %p679_p11 = pnand %p678_p7, %p674_p13 }
  0x28   : > { %682 = shalt.err (!%p679_p11)
}
  0x29   : > { %556 = dma.hbm_to_vmem [thread:$0]  (!%p918_p2), %s202_s5, 256, %s204_s30, %s192_s9, %s803_s6, %s803_s6, %s804_s7  }
  0x2a   : > { %215 = sbr.rel (%p876_p8) target bundleno = 207 (0xcf), region = 32  ;;  %s938_s20 = sand.u32 (!%p876_p8), 1, %s792_s16  }
  0x2b   : > { %s941_s29 = sshll.u32 (!%p876_p8), %s938_s20, 4  ;;  %s218_s11 = scalar_lea.sflag (!%p876_p8), [#allocation3], %s938_s20 }
  0x2c   : > { %s221_s12 = scalar_lea.vmem (!%p876_p8), [#allocation2], %s941_s29 }
  0x2f   : > { %771 = dma.done.wait (%p863_p4), %s218_s11, 256  }
  0x30   : > { %773 = vsyncadd (%p863_p4), %s218_s11, 4294967040 }
  0x31   : > { %775 = dma.done.wait (%p46_p1), [#allocation6], 1024  }
  0x32   : > { %777 = vsyncadd (%p46_p1), [#allocation6], 4294966272  ;;  %v270_v0 = vld [vmem:[#allocation5 + $0x18] sm:$0xff]  ;;  %v269_v2 = vld [vmem:[#allocation5 + $0x10] sm:$0xff]  ;;  %vm271_vm0 = vcmask 261120   ;;  %s522_s21 = sshll.u32 %s854_s19, 4 }
  0x33   : > { %v306_v1 = vld [vmem:[#allocation7 + $0x18] sm:$0xff]  ;;  %524 = vmatpush.msra.mxu2 %v270_v0  ;;  %v305_v3 = vld [vmem:[#allocation7 + $0x10] sm:$0xff]  ;;  %v268_v4 = vld [vmem:[#allocation5 + $0x8] sm:$0xff]  ;;  %290 = vmatpush.msra.mxu0 %v270_v0  ;;  %s349_s7 = scalar_lea.hbm %s1023_s3, %s522_s21  ;;  %s254_s30 = scalar_lea.vmem [#allocation8], %s941_s29 }
  0x34   : > { %528 = vmatpush.msra.mxu3 %v306_v1  ;;  %v304_v5 = vld [vmem:[#allocation7 + $0x8] sm:$0xff]  ;;  %319 = vmatpush.msra.mxu1 %v306_v1  ;;  %v267_v6 = vld [vmem:[#allocation5] sm:$0xff]  ;;  %s350_s5 = sshll.u32 %s254_s30, 4  ;;  %s261_s8 = scalar_lea.vmem [#allocation9], %s941_s29  ;;  %s967_s5 = int_to_ptr.vmem [resolvable:$true] %s350_s5 }
  0x35   : > { %525 = vmatpush.msra.mxu2 %v269_v2  ;;  %v303_v7 = vld [vmem:[#allocation7] sm:$0xff]  ;;  %291 = vmatpush.msra.mxu0 %v269_v2  ;;  %v266_v8 = vld [vmem:[%s221_s12 + $0x8] sm:$0xff]  ;;  %s367_s9 = sshll.u32 %s261_s8, 4  ;;  %s366_s25 = scalar_lea.hbm %s1024_s4, %s522_s21  ;;  %s970_s9 = int_to_ptr.vmem [resolvable:$true] %s367_s9 }
  0x36   : > { %529 = vmatpush.msra.mxu3 %v305_v3  ;;  %320 = vmatpush.msra.mxu1 %v305_v3  ;;  %v265_v9 = vld [vmem:[%s221_s12] sm:$0xff]  ;;  %s352_s27 = sshll.u32 %s349_s7, 4  ;;  %s369_s19 = sshll.u32 %s366_s25, 4  ;;  %s353_s27 = int_to_ptr.hbm [resolvable:$true] %s352_s27  ;;  %s973_s19 = int_to_ptr.hbm [resolvable:$true] %s369_s19 }
  0x37   : > { %526 = vmatpush.msra.mxu2 %v268_v4  ;;  %292 = vmatpush.msra.mxu0 %v268_v4  ;;  %s333_s28 = scalar_lea.sflag [#allocation4], %s938_s20  ;;  %s712_s29 = sshra.s32 %s353_s27, 4  ;;  %s713_s29 = int_to_ptr.hbm [resolvable:$true] %s712_s29 }
  0x38   : > { %530 = vmatpush.msra.mxu3 %v304_v5  ;;  %321 = vmatpush.msra.mxu1 %v304_v5  ;;  %s714_s11 = scalar_lea.hbm %s713_s29, 16  ;;  %s718_s26 = scalar_lea.hbm %s1023_s3, 32 }
  0x39   : > { %527 = vmatpush.msra.mxu2 %v267_v6  ;;  %293 = vmatpush.msra.mxu0 %v267_v6  ;;  %p715_p1 = scmp.ne.s32.totalorder %s713_s29, %s714_s11  ;;  %p719_p11 = scmp.lt.s32.totalorder %s713_s29, %s1023_s3 }
  0x3a   : > { %531 = vmatpush.msra.mxu3 %v303_v7  ;;  %510 = vmatmul.msk.f32.vlgmr.msra.gmra.mxu2 %vm271_vm0, %v266_v8  ;;  %p720_p2 = scmp.lt.s32.totalorder %s718_s26, %s714_s11 }
  0x3b   : > { %512 = vmatmul.msk.f32.vlgmr.msra.gmra.mxu3 %vm271_vm0, %v266_v8  ;;  %322 = vmatpush.msra.mxu1 %v303_v7  ;;  %p716_p4 = pnand %p715_p1, %p905_p3 }
  0x3c   : > { %509 = vmatmul.msk.f32.vlgmr.msra.gmra.mxu0 %vm271_vm0, %v265_v9  ;;  %511 = vmatmul.msk.f32.vlgmr.msra.gmra.mxu1 %vm271_vm0, %v265_v9  ;;  %p721_p9 = por %p720_p2, %p719_p11 }
  0x3d   : > { %p717_p8 = pneg %p716_p4 }
  0x3f   : > { %p722_p10 = pnand %p721_p9, %p717_p8 }
  0xb9   : > { %v295_v10 = vpop.f32.mrf.mxu0  ;;  %v324_v11 = vpop.f32.mrf.mxu1 }
  0xba   : > { %301 = vst.msk [vmem:[%s254_s30] sm:$0xff] %vm271_vm0, %v295_v10 }
  0xbb   : > { %330 = vst.msk [vmem:[%s261_s8] sm:$0xff] %vm271_vm0, %v324_v11 }
  0xbd   : > { %v298_v12 = vpop.f32.mrf.mxu2 }
  0xbe   : > { %v327_v13 = vpop.f32.mrf.mxu3  ;;  %302 = vst.msk [vmem:[%s254_s30 + $0x8] sm:$0xff] %vm271_vm0, %v298_v12 }
  0xbf   : > { %331 = vst.msk [vmem:[%s261_s8 + $0x8] sm:$0xff] %vm271_vm0, %v327_v13 }
  0xc0   : > { %725 = shalt.err (!%p722_p10)
}
  0xc1   : > { %s806_s30 = smov 128   ;;  %s807_s8 = smov 8  }
  0xc2   : > { %542 = dma.vmem_to_hbm [thread:$0]  (%p905_p3), %s967_s5, 256, %s353_s27, %s333_s28, %s806_s30, %s806_s30, %s807_s8  }
  0xc3   : > { %s338_s24 = scalar_lea.sflag [#allocation10], %s938_s20  ;;  %s740_s23 = sshra.s32 %s973_s19, 4  ;;  %s741_s23 = int_to_ptr.hbm [resolvable:$true] %s740_s23 }
  0xc4   : > { %s742_s25 = scalar_lea.hbm %s741_s23, 16  ;;  %s746_s12 = scalar_lea.hbm %s1024_s4, 32 }
  0xc5   : > { %p743_p12 = scmp.ne.s32.totalorder %s741_s23, %s742_s25  ;;  %p747_p5 = scmp.lt.s32.totalorder %s741_s23, %s1024_s4 }
  0xc6   : > { %p748_p7 = scmp.lt.s32.totalorder %s746_s12, %s742_s25 }
  0xc7   : > { %p744_p13 = pnand %p743_p12, %p905_p3 }
  0xc8   : > { %p749_p1 = por %p748_p7, %p747_p5 }
  0xc9   : > { %p745_p0 = pneg %p744_p13 }
  0xcb   : > { %p750_p4 = pnand %p749_p1, %p745_p0 }
  0xcd   : > { %753 = shalt.err (!%p750_p4)
}
  0xce   : > { %543 = dma.vmem_to_hbm [thread:$0]  (%p905_p3), %s970_s9, 256, %s973_s19, %s338_s24, %s806_s30, %s806_s30, %s807_s8  }
  0xcf PF: > { %s384_s20 = sand.u32 1, %s788_s15   ;;  %p1030_p8 = scmp.ge.s32.totalorder %s800_s18, 2 }
  0xd0   : > { %s385_s5 = scalar_lea.sflag [#allocation4], %s384_s20 }
  0xd1   : > { %p558_p11 = pnand %p1030_p8, %p868_p6 }
  0xd3   : > { %p559_p2 = pneg %p558_p11 }
  0xd5   : > { %779 = dma.done.wait (%p559_p2), %s385_s5, 256  }
  0xd6   : > { %781 = vsyncadd (%p559_p2), %s385_s5, 4294967040  ;;  %s395_s27 = scalar_lea.sflag [#allocation10], %s384_s20 }
  0xd7   : > { %783 = dma.done.wait (%p559_p2), %s395_s27, 256  }
  0xd8   : > { %785 = vsyncadd (%p559_p2), %s395_s27, 4294967040  ;;  %p22_p3 = scmp.ge.s32.totalorder %s895_s10, 4   ;;  %s1031_s15 = smov %s792_s16 }
  0xd9   : > { %s1032_s16 = smov %s796_s17  ;;  %s1033_s17 = smov %s911_s14 }
  0xda   : > { %s1034_s18 = smov %s895_s10  ;;  %24 = sbr.rel (!%p22_p3) target bundleno = 8 (0x8), region = 102 }
  0xdf   :  { %401 = vsyncpa [#allocation3], 1 }
  0xe0   :  { %403 = vsyncpa [#allocation3 + $0x1], 1 }
  0xe1   :  { %404 = vsyncpa [#allocation6], 1 }
  0xe2   :  { %405 = vsyncpa [#allocation4], 1 }
  0xe3   :  { %407 = vsyncpa [#allocation4 + $0x1], 1 }
  0xe4   :  { %408 = vsyncpa [#allocation10], 1 }
  0xe5   :  { %410 = vsyncpa [#allocation10 + $0x1], 1 }

</bundles_post_ra>
